<compile_context>
chip_gen: v6e
topology: v6e:2x2x1
jax: 0.10.0
libtpu: 0.0.40
codegen_flags: <defaults>
</compile_context>

<pallas_src>
import functools

import jax
import jax.numpy as jnp
import numpy as np
from jax.experimental import pallas as pl
from jax.experimental.pallas import tpu as pltpu


def _round_up(x, m):
    return (x + m - 1) // m * m


def _vmem_limit_bytes():
    """~3/4 of physical VMEM: 96 MiB on v5e/v6e, 48 MiB on v7x."""
    try:
        cap = getattr(pltpu.get_tpu_info(), "vmem_capacity_bytes", None)
        if cap:
            return int(cap) * 3 // 4
    except Exception:
        pass
    return 48 * 1024 * 1024


# ---------------------------------------------------------------------------
# Path A: fused kernel — whole time axis resident per batch element.
# ---------------------------------------------------------------------------
def _fused_kernel(x_ref, w_ref, p_ref, o_ref, slab_ref, *,
                  ksize, dilation, pad, t_in, t_out, cin, cin_p):
    # x_ref : (1, Cin, T)          one (unpadded) batch element
    # w_ref : (Cout, K*Cin_p)      im2col weights (k-major, channel-minor), bf16
    # p_ref : (Cout, 3)            packed [bias, gamma, beta] (f32)
    # o_ref : (1, Cout, T_out)
    # slab  : (K*Cin_p, T_out)     bf16 im2col slab (VMEM scratch)

    for k in range(ksize):                        # static, unrolled
        off = k * dilation - pad                  # input offset for output t = 0
        lo = min(max(0, -off), t_out)             # first valid output column
        hi = max(min(t_out, t_in - off), lo)      # one past last valid column
        r0 = k * cin_p

        # Megacore-safe zeroing: only the regions the tap write below never
        # covers (conv halo columns + channel-padding rows), every grid step.
        if lo > 0:
            slab_ref[r0:r0 + cin, 0:lo] = jnp.zeros((cin, lo), slab_ref.dtype)
        if hi < t_out:
            slab_ref[r0:r0 + cin, hi:t_out] = jnp.zeros((cin, t_out - hi),
                                                        slab_ref.dtype)
        if cin_p > cin:
            slab_ref[r0 + cin:r0 + cin_p, :] = jnp.zeros((cin_p - cin, t_out),
                                                         slab_ref.dtype)
        # Tap written straight from the input ref (streamed vld->vst), cast to
        # the bf16 matmul dtype on the way.
        if lo < hi:
            slab_ref[r0:r0 + cin, lo:hi] = (
                x_ref[0, :, lo + off:hi + off].astype(slab_ref.dtype))

    # One MXU matmul for all K taps, f32 accumulation.
    acc = jnp.dot(w_ref[...], slab_ref[...], preferred_element_type=jnp.float32)
    acc = acc + p_ref[:, 0:1]                     # conv bias

    # Global LayerNorm over (channels, time), f32 stats.
    inv_n = 1.0 / float(acc.shape[0] * acc.shape[1])
    s = jnp.sum(acc)
    ss = jnp.sum(acc * acc)
    mean = s * inv_n
    var = jnp.maximum(ss * inv_n - mean * mean, 0.0)
    inv = jax.lax.rsqrt(var + 1e-8)               # EUP rsqrt

    scale = p_ref[:, 1:2] * inv                   # gamma folded into scale
    shift = p_ref[:, 2:3] - scale * mean          # beta folded into shift
    o_ref[0] = (acc * scale + shift).astype(o_ref.dtype)


# ---------------------------------------------------------------------------
# Path B: time-tiled, two-pass LayerNorm (for large T / v7x VMEM).
# ---------------------------------------------------------------------------
def _conv_stats_kernel(x_ref, w_ref, p_ref, conv_ref, stats_ref, slab_ref, *,
                       ksize, dilation, t_tile, t_out, cin_p):
    # x_ref    : (1, Cin_p, T_padded)   halo- and channel-padded, resident per batch
    # conv_ref : (1, Cout, t_tile)      conv+bias output tile (f32)
    # stats_ref: (1, 1, Cout, 2)        per-tile per-channel [sum, sumsq]
    t = pl.program_id(1)
    gs = t * t_tile                                   # multiple of 128

    for k in range(ksize):                            # static, unrolled
        start = pl.multiple_of(gs, 128) + k * dilation
        slab_ref[k * cin_p:(k + 1) * cin_p, :] = (
            x_ref[0, :, pl.ds(start, t_tile)].astype(slab_ref.dtype))

    acc = jnp.dot(w_ref[...], slab_ref[...], preferred_element_type=jnp.float32)
    acc = acc + p_ref[:, 0:1]                         # conv bias
    conv_ref[0] = acc.astype(conv_ref.dtype)

    # Mask columns past the true output length (last, partial tile) out of the
    # LayerNorm statistics.
    col = gs + jax.lax.broadcasted_iota(jnp.int32, (1, t_tile), 1)
    accm = jnp.where(col < t_out, acc, 0.0)
    stats_ref[0, 0, :, 0:1] = jnp.sum(accm, axis=-1, keepdims=True)
    stats_ref[0, 0, :, 1:2] = jnp.sum(accm * accm, axis=-1, keepdims=True)


def _normalize_kernel(conv_ref, scale_ref, shift_ref, o_ref):
    # Elementwise scale/shift; lane-dense tile stores.
    o_ref[0] = (conv_ref[0] * scale_ref[0] + shift_ref[0]).astype(o_ref.dtype)


# ---------------------------------------------------------------------------
# Public wrapper.
# ---------------------------------------------------------------------------
def dilated_conv_norm(x, weight, bias, gamma, beta, *, stride=1, dilation=1,
                      matmul_dtype=jnp.bfloat16, time_tile=None):
    """Pallas DilatedConvNorm.forward (groups=1, stride=1)."""
    assert stride == 1      # TODO(synk): stride>1 not implemented
    B, Cin, T = x.shape
    Cout, Cin_w, K = weight.shape
    assert Cin_w == Cin     # TODO(synk): groups>1 not implemented

    pad = (K - 1) // 2 * dilation
    t_out = T + 2 * pad - dilation * (K - 1)

    slab_itemsize = np.dtype(matmul_dtype).itemsize
    sub = 16 if slab_itemsize == 2 else 8             # sublane multiple
    cin_p = _round_up(Cin, sub)

    # im2col weights: w_flat[o, k*cin_p + c] = weight[o, c, k] (zero-padded c).
    w_flat = jnp.transpose(weight, (0, 2, 1))                       # (Cout,K,Cin)
    w_flat = jnp.pad(w_flat, ((0, 0), (0, 0), (0, cin_p - Cin)))
    w_flat = w_flat.reshape(Cout, K * cin_p).astype(matmul_dtype)
    # bias/gamma/beta packed: one DMA instead of three.
    params = jnp.stack([bias, gamma, beta], axis=1).astype(jnp.float32)

    vmem_limit = _vmem_limit_bytes()

    # Estimated VMEM footprint of the fused whole-T path.
    fused_bytes = (2 * Cin * T * x.dtype.itemsize            # x, double-buffered
                   + 2 * Cout * t_out * x.dtype.itemsize     # out, double-buffered
                   + K * cin_p * t_out * slab_itemsize       # im2col slab
                   + Cout * t_out * 4                        # f32 accumulator
                   + 2 * Cout * K * cin_p * slab_itemsize)   # resident weights

    if time_tile is None and fused_bytes <= (vmem_limit * 3) // 5:
        # ----------------------- fused path -----------------------
        kernel = functools.partial(
            _fused_kernel, ksize=K, dilation=dilation, pad=pad,
            t_in=T, t_out=t_out, cin=Cin, cin_p=cin_p)
        return pl.pallas_call(
            kernel,
            out_shape=jax.ShapeDtypeStruct((B, Cout, t_out), x.dtype),
            grid_spec=pltpu.PrefetchScalarGridSpec(
                num_scalar_prefetch=0,
                grid=(B,),
                in_specs=[
                    pl.BlockSpec((1, Cin, T), lambda b: (b, 0, 0)),
                    pl.BlockSpec((Cout, K * cin_p), lambda b: (0, 0)),
                    pl.BlockSpec((Cout, 3), lambda b: (0, 0)),
                ],
                out_specs=pl.BlockSpec((1, Cout, t_out), lambda b: (b, 0, 0)),
                scratch_shapes=[pltpu.VMEM((K * cin_p, t_out), matmul_dtype)],
            ),
            compiler_params=pltpu.CompilerParams(
                dimension_semantics=("parallel",),
                vmem_limit_bytes=vmem_limit,
            ),
        )(x, w_flat, params)

    # ----------------------- tiled two-pass path -----------------------
    if time_tile is None:
        time_tile = min(2048, _round_up(t_out, 128))
    t_tile = _round_up(int(time_tile), 128)
    n_t = pl.cdiv(t_out, t_tile)

    # One wrapper-side pad (only on this large-T path, where its cost is
    # negligible): conv halo + tile remainder on time, channel pad to cin_p.
    # Every slab element is then overwritten every step -> no in-kernel zeroing.
    t_padded = n_t * t_tile + (K - 1) * dilation
    x_pad = jnp.pad(x, ((0, 0), (0, cin_p - Cin), (pad, t_padded - T - pad)))

    conv_out, stats = pl.pallas_call(
        functools.partial(_conv_stats_kernel, ksize=K, dilation=dilation,
                          t_tile=t_tile, t_out=t_out, cin_p=cin_p),
        out_shape=(jax.ShapeDtypeStruct((B, Cout, t_out), jnp.float32),
                   jax.ShapeDtypeStruct((B, n_t, Cout, 2), jnp.float32)),
        grid_spec=pltpu.PrefetchScalarGridSpec(
            num_scalar_prefetch=0,
            grid=(B, n_t),
            in_specs=[
                pl.BlockSpec((1, cin_p, t_padded), lambda b, t: (b, 0, 0)),
                pl.BlockSpec((Cout, K * cin_p), lambda b, t: (0, 0)),
                pl.BlockSpec((Cout, 3), lambda b, t: (0, 0)),
            ],
            out_specs=(
                pl.BlockSpec((1, Cout, t_tile), lambda b, t: (b, 0, t)),
                pl.BlockSpec((1, 1, Cout, 2), lambda b, t: (b, t, 0, 0)),
            ),
            scratch_shapes=[pltpu.VMEM((K * cin_p, t_tile), matmul_dtype)],
        ),
        compiler_params=pltpu.CompilerParams(
            dimension_semantics=("parallel", "parallel"),
            vmem_limit_bytes=vmem_limit,
        ),
    )(x_pad, w_flat, params)

    # Tiny per-batch reduction of the partial sums (pairwise over tiles/chans).
    n = float(Cout * t_out)
    s = jnp.sum(stats[..., 0], axis=(1, 2))              # (B,)
    ss = jnp.sum(stats[..., 1], axis=(1, 2))             # (B,)
    mean = s / n
    var = jnp.maximum(ss / n - mean * mean, 0.0)
    inv = jax.lax.rsqrt(var + 1e-8)
    scale = (gamma[None, :] * inv[:, None]).astype(jnp.float32)      # (B, Cout)
    shift = (beta[None, :] - scale * mean[:, None]).astype(jnp.float32)
    scale = scale[:, :, None]
    shift = shift[:, :, None]

    return pl.pallas_call(
        _normalize_kernel,
        out_shape=jax.ShapeDtypeStruct((B, Cout, t_out), x.dtype),
        grid_spec=pltpu.PrefetchScalarGridSpec(
            num_scalar_prefetch=0,
            grid=(B, n_t),
            in_specs=[
                pl.BlockSpec((1, Cout, t_tile), lambda b, t: (b, 0, t)),
                pl.BlockSpec((1, Cout, 1), lambda b, t: (b, 0, 0)),
                pl.BlockSpec((1, Cout, 1), lambda b, t: (b, 0, 0)),
            ],
            out_specs=pl.BlockSpec((1, Cout, t_tile), lambda b, t: (b, 0, t)),
        ),
        compiler_params=pltpu.CompilerParams(
            dimension_semantics=("parallel", "parallel"),
            vmem_limit_bytes=vmem_limit,
        ),
    )(conv_out, scale, shift)


def _reference(x, weight, bias, gamma, beta, dilation):
    """Plain-JAX reference mirroring the PyTorch module."""
    K = weight.shape[2]
    pad = (K - 1) // 2 * dilation
    y = jax.lax.conv_general_dilated(
        x, weight, window_strides=(1,), padding=[(pad, pad)],
        rhs_dilation=(dilation,), dimension_numbers=("NCH", "OIH", "NCH"))
    y = y + bias[None, :, None]
    mean = y.mean(axis=(1, 2), keepdims=True)
    var = ((y - mean) ** 2).mean(axis=(1, 2), keepdims=True)
    yn = (y - mean) / jnp.sqrt(var + 1e-8)
    return gamma[None, :, None] * yn + beta[None, :, None]


if __name__ == "__main__":
    # Module-consistent small shapes: nIn=4, nOut=8, kSize=3, d=2, stride=1.
    B, Cin, Cout, K, d = 2, 4, 8, 3, 2
    key = jax.random.PRNGKey(0)
    kx, kw, kb, kx2 = jax.random.split(key, 4)

    weight = jax.random.normal(kw, (Cout, Cin, K), dtype=jnp.float32) * 0.3
    bias = jax.random.normal(kb, (Cout,), dtype=jnp.float32) * 0.1
    gamma = jnp.ones((Cout,), dtype=jnp.float32)   # GlobLN init: ones
    beta = jnp.zeros((Cout,), dtype=jnp.float32)   # GlobLN init: zeros

    # bf16 matmul path -> compare to the f32 reference with a bf16 tolerance.
    TOL = dict(atol=3e-2, rtol=3e-2)

    # --- Path A: fused whole-T kernel (small T, auto-selected). ---
    T = 16
    x = jax.random.normal(kx, (B, Cin, T), dtype=jnp.float32)
    out = dilated_conv_norm(x, weight, bias, gamma, beta, stride=1, dilation=d)
    out = jax.block_until_ready(out)
    ref = _reference(x, weight, bias, gamma, beta, d)
    assert out.shape == ref.shape
    assert jnp.allclose(out, ref, **TOL)

    # --- Path B: time-tiled two-pass LayerNorm (forced via time_tile). ---
    T2 = 256
    x2 = jax.random.normal(kx2, (B, Cin, T2), dtype=jnp.float32)
    out2 = dilated_conv_norm(x2, weight, bias, gamma, beta, stride=1,
                             dilation=d, time_tile=128)
    out2 = jax.block_until_ready(out2)
    ref2 = _reference(x2, weight, bias, gamma, beta, d)
    assert out2.shape == ref2.shape
    assert jnp.allclose(out2, ref2, **TOL)

    print("KERNEL_OK")
</pallas_src>

<mosaic_0001>
module attributes {stable_mosaic.version = 11 : i64} {
  func.func @_fused_kernel(%arg0: i32, %arg1: memref<1x4x16xf32, #tpu.memory_space<vmem>>, %arg2: memref<8x48xbf16, #tpu.memory_space<vmem>>, %arg3: memref<8x3xf32, #tpu.memory_space<vmem>>, %arg4: memref<1x8x16xf32, #tpu.memory_space<vmem>>, %arg5: memref<48x16xbf16, #tpu.memory_space<vmem>>) attributes {dimension_semantics = [#tpu.dimension_semantics<parallel>], iteration_bounds = array<i64: 2>, scalar_prefetch = 0 : i64, scratch_operands = 1 : i64, tpu.core_type = #tpu.core_type<tc>, window_params = [{transform_indices = @transform_0, window_bounds = array<i64: 1, 4, 16>}, {pipeline_mode = #tpu.pipeline_mode<synchronous>, transform_indices = @transform_1, window_bounds = array<i64: 8, 48>}, {pipeline_mode = #tpu.pipeline_mode<synchronous>, transform_indices = @transform_2, window_bounds = array<i64: 8, 3>}, {transform_indices = @transform_3, window_bounds = array<i64: 1, 8, 16>}]} {
    %cst = arith.constant 0.000000e+00 : bf16
    %0 = vector.broadcast %cst : bf16 to vector<4x2xbf16>
    %c0 = arith.constant 0 : index
    %c0_0 = arith.constant 0 : index
    %1 = vector.load %arg5[%c0, %c0_0] : memref<48x16xbf16, #tpu.memory_space<vmem>>, vector<4x2xbf16>
    tpu.vector_store %arg5[%c0, %c0_0], %0 {strides = array<i32>} : memref<48x16xbf16, #tpu.memory_space<vmem>>, vector<4x2xbf16>,
    %cst_1 = arith.constant 0.000000e+00 : bf16
    %2 = vector.broadcast %cst_1 : bf16 to vector<12x16xbf16>
    %c4 = arith.constant 4 : index
    %c0_2 = arith.constant 0 : index
    %3 = vector.load %arg5[%c4, %c0_2] : memref<48x16xbf16, #tpu.memory_space<vmem>>, vector<12x16xbf16>
    tpu.vector_store %arg5[%c4, %c0_2], %2 {strides = array<i32>} : memref<48x16xbf16, #tpu.memory_space<vmem>>, vector<12x16xbf16>,
    %c0_3 = arith.constant 0 : index
    %c0_4 = arith.constant 0 : index
    %c0_5 = arith.constant 0 : index
    %4 = vector.load %arg1[%c0_3, %c0_4, %c0_5] : memref<1x4x16xf32, #tpu.memory_space<vmem>>, vector<1x4x14xf32>
    %5 = vector.shape_cast %4 : vector<1x4x14xf32> to vector<4x14xf32>
    %6 = arith.truncf %5 : vector<4x14xf32> to vector<4x14xbf16>
    %c0_6 = arith.constant 0 : index
    %c2 = arith.constant 2 : index
    %7 = vector.load %arg5[%c0_6, %c2] : memref<48x16xbf16, #tpu.memory_space<vmem>>, vector<4x14xbf16>
    tpu.vector_store %arg5[%c0_6, %c2], %6 {strides = array<i32>} : memref<48x16xbf16, #tpu.memory_space<vmem>>, vector<4x14xbf16>,
    %cst_7 = arith.constant 0.000000e+00 : bf16
    %8 = vector.broadcast %cst_7 : bf16 to vector<12x16xbf16>
    %c20 = arith.constant 20 : index
    %c0_8 = arith.constant 0 : index
    %9 = vector.load %arg5[%c20, %c0_8] : memref<48x16xbf16, #tpu.memory_space<vmem>>, vector<12x16xbf16>
    tpu.vector_store %arg5[%c20, %c0_8], %8 {strides = array<i32>} : memref<48x16xbf16, #tpu.memory_space<vmem>>, vector<12x16xbf16>,
    %c0_9 = arith.constant 0 : index
    %c0_10 = arith.constant 0 : index
    %c0_11 = arith.constant 0 : index
    %10 = vector.load %arg1[%c0_9, %c0_10, %c0_11] : memref<1x4x16xf32, #tpu.memory_space<vmem>>, vector<1x4x16xf32>
    %11 = vector.shape_cast %10 : vector<1x4x16xf32> to vector<4x16xf32>
    %12 = arith.truncf %11 : vector<4x16xf32> to vector<4x16xbf16>
    %c16 = arith.constant 16 : index
    %c0_12 = arith.constant 0 : index
    %13 = vector.load %arg5[%c16, %c0_12] : memref<48x16xbf16, #tpu.memory_space<vmem>>, vector<4x16xbf16>
    tpu.vector_store %arg5[%c16, %c0_12], %12 {strides = array<i32>} : memref<48x16xbf16, #tpu.memory_space<vmem>>, vector<4x16xbf16>,
    %cst_13 = arith.constant 0.000000e+00 : bf16
    %14 = vector.broadcast %cst_13 : bf16 to vector<4x2xbf16>
    %c32 = arith.constant 32 : index
    %c14 = arith.constant 14 : index
    %15 = vector.load %arg5[%c32, %c14] : memref<48x16xbf16, #tpu.memory_space<vmem>>, vector<4x2xbf16>
    tpu.vector_store %arg5[%c32, %c14], %14 {strides = array<i32>} : memref<48x16xbf16, #tpu.memory_space<vmem>>, vector<4x2xbf16>,
    %cst_14 = arith.constant 0.000000e+00 : bf16
    %16 = vector.broadcast %cst_14 : bf16 to vector<12x16xbf16>
    %c36 = arith.constant 36 : index
    %c0_15 = arith.constant 0 : index
    %17 = vector.load %arg5[%c36, %c0_15] : memref<48x16xbf16, #tpu.memory_space<vmem>>, vector<12x16xbf16>
    tpu.vector_store %arg5[%c36, %c0_15], %16 {strides = array<i32>} : memref<48x16xbf16, #tpu.memory_space<vmem>>, vector<12x16xbf16>,
    %c0_16 = arith.constant 0 : index
    %c0_17 = arith.constant 0 : index
    %c2_18 = arith.constant 2 : index
    %18 = vector.load %arg1[%c0_16, %c0_17, %c2_18] : memref<1x4x16xf32, #tpu.memory_space<vmem>>, vector<1x4x14xf32>
    %19 = vector.shape_cast %18 : vector<1x4x14xf32> to vector<4x14xf32>
    %20 = arith.truncf %19 : vector<4x14xf32> to vector<4x14xbf16>
    %c32_19 = arith.constant 32 : index
    %c0_20 = arith.constant 0 : index
    %21 = vector.load %arg5[%c32_19, %c0_20] : memref<48x16xbf16, #tpu.memory_space<vmem>>, vector<4x14xbf16>
    tpu.vector_store %arg5[%c32_19, %c0_20], %20 {strides = array<i32>} : memref<48x16xbf16, #tpu.memory_space<vmem>>, vector<4x14xbf16>,
    %c0_21 = arith.constant 0 : index
    %c0_22 = arith.constant 0 : index
    %22 = vector.load %arg2[%c0_21, %c0_22] : memref<8x48xbf16, #tpu.memory_space<vmem>>, vector<8x48xbf16>
    %c0_23 = arith.constant 0 : index
    %c0_24 = arith.constant 0 : index
    %23 = vector.load %arg5[%c0_23, %c0_24] : memref<48x16xbf16, #tpu.memory_space<vmem>>, vector<48x16xbf16>
    %cst_25 = arith.constant dense<0.000000e+00> : vector<8x16xf32>
    %24 = tpu.matmul %22, %23, %cst_25 {dimension_numbers = #tpu.dot_dimension_numbers<[1], [0], [0], [1], [0, 0, 1, 1], [], []>} : vector<8x48xbf16>, vector<48x16xbf16>, vector<8x16xf32> -> vector<8x16xf32>
    %c0_26 = arith.constant 0 : index
    %c0_27 = arith.constant 0 : index
    %25 = vector.load %arg3[%c0_26, %c0_27] : memref<8x3xf32, #tpu.memory_space<vmem>>, vector<8x1xf32>
    %26 = vector.broadcast %25 : vector<8x1xf32> to vector<8x16xf32>
    %27 = arith.addf %24, %26 : vector<8x16xf32>
    %28 = vector.shape_cast %27 : vector<8x16xf32> to vector<1x8x16xf32>
    %cst_28 = arith.constant dense<0.000000e+00> : vector<1xf32>
    %29 = vector.multi_reduction <add>, %28, %cst_28 [1, 2] : vector<1x8x16xf32> to vector<1xf32>
    %30 = vector.shape_cast %29 : vector<1xf32> to vector<1x1x1xf32>
    %31 = vector.extract %30[0, 0, 0] : f32 from vector<1x1x1xf32>
    %32 = arith.mulf %27, %27 : vector<8x16xf32>
    %33 = vector.shape_cast %32 : vector<8x16xf32> to vector<1x8x16xf32>
    %cst_29 = arith.constant dense<0.000000e+00> : vector<1xf32>
    %34 = vector.multi_reduction <add>, %33, %cst_29 [1, 2] : vector<1x8x16xf32> to vector<1xf32>
    %35 = vector.shape_cast %34 : vector<1xf32> to vector<1x1x1xf32>
    %36 = vector.extract %35[0, 0, 0] : f32 from vector<1x1x1xf32>
    %cst_30 = arith.constant 7.812500e-03 : f32
    %37 = arith.mulf %31, %cst_30 : f32
    %cst_31 = arith.constant 7.812500e-03 : f32
    %38 = arith.mulf %36, %cst_31 : f32
    %39 = arith.mulf %37, %37 : f32
    %40 = arith.subf %38, %39 : f32
    %cst_32 = arith.constant 0.000000e+00 : f32
    %41 = arith.maximumf %40, %cst_32 : f32
    %cst_33 = arith.constant 9.99999993E-9 : f32
    %42 = arith.addf %41, %cst_33 : f32
    %43 = math.rsqrt %42 : f32
    %c0_34 = arith.constant 0 : index
    %c1 = arith.constant 1 : index
    %44 = vector.load %arg3[%c0_34, %c1] : memref<8x3xf32, #tpu.memory_space<vmem>>, vector<8x1xf32>
    %45 = vector.broadcast %43 : f32 to vector<8x1xf32>
    %46 = arith.mulf %44, %45 : vector<8x1xf32>
    %c0_35 = arith.constant 0 : index
    %c2_36 = arith.constant 2 : index
    %47 = vector.load %arg3[%c0_35, %c2_36] : memref<8x3xf32, #tpu.memory_space<vmem>>, vector<8x1xf32>
    %48 = vector.broadcast %37 : f32 to vector<8x1xf32>
    %49 = arith.mulf %46, %48 : vector<8x1xf32>
    %50 = arith.subf %47, %49 : vector<8x1xf32>
    %51 = vector.broadcast %46 : vector<8x1xf32> to vector<8x16xf32>
    %52 = arith.mulf %27, %51 : vector<8x16xf32>
    %53 = vector.broadcast %50 : vector<8x1xf32> to vector<8x16xf32>
    %54 = arith.addf %52, %53 : vector<8x16xf32>
    %c0_37 = arith.constant 0 : index
    %c0_38 = arith.constant 0 : index
    %c0_39 = arith.constant 0 : index
    %55 = vector.load %arg4[%c0_37, %c0_38, %c0_39] : memref<1x8x16xf32, #tpu.memory_space<vmem>>, vector<1x8x16xf32>
    %56 = vector.shape_cast %55 : vector<1x8x16xf32> to vector<8x16xf32>
    %57 = vector.shape_cast %54 : vector<8x16xf32> to vector<1x8x16xf32>
    tpu.vector_store %arg4[%c0_37, %c0_38, %c0_39], %57 {strides = array<i32>} : memref<1x8x16xf32, #tpu.memory_space<vmem>>, vector<1x8x16xf32>,
    return
  }
  func.func @transform_0(%arg0: i32) -> (i32, i32, i32) {
    %c0_i32 = arith.constant 0 : i32
    %c0_i32_0 = arith.constant 0 : i32
    %c0_i32_1 = arith.constant 0 : i32
    return %arg0, %c0_i32, %c0_i32_0 : i32, i32, i32
  }
  func.func @transform_1(%arg0: i32) -> (i32, i32) {
    %c0_i32 = arith.constant 0 : i32
    %c0_i32_0 = arith.constant 0 : i32
    %c0_i32_1 = arith.constant 0 : i32
    return %c0_i32, %c0_i32_0 : i32, i32
  }
  func.func @transform_2(%arg0: i32) -> (i32, i32) {
    %c0_i32 = arith.constant 0 : i32
    %c0_i32_0 = arith.constant 0 : i32
    %c0_i32_1 = arith.constant 0 : i32
    return %c0_i32, %c0_i32_0 : i32, i32
  }
  func.func @transform_3(%arg0: i32) -> (i32, i32, i32) {
    %c0_i32 = arith.constant 0 : i32
    %c0_i32_0 = arith.constant 0 : i32
    %c0_i32_1 = arith.constant 0 : i32
    return %arg0, %c0_i32, %c0_i32_0 : i32, i32, i32
  }
}

</mosaic_0001>

<bundles_post_ra>
// kernel: tpu_custom_call.1
= control target key start
LH: loop header
LB: loop body
LE: loop exit
PB: predicated region body
PF: predicated region fallthrough
CT: control target
= control target key end

     0   :  { %8 = vsyncpa [#allocation4], 0  ;;  %s692_s0 = inlined_call_operand.vmem [shape: f32[2,4,16], index: 0, kind: input, shape index: {}]   ;;  %s693_s1 = inlined_call_operand.vmem [shape: bf16[8,48], index: 1, kind: input, shape index: {}]   ;;  %s694_s2 = inlined_call_operand.vmem [shape: f32[8,3], index: 2, kind: input, shape index: {}]   ;;  %s695_s3 = inlined_call_operand.hbm [shape: f32[2,8,16], index: 3, kind: output, shape index: {}]  }
   0x1   :  { %10 = vsyncpa [#allocation4 + $0x1], 0  ;;  %s591_s12 = smov 0   ;;  %s593_s13 = smov 0  }
   0x2   :  { %s595_s14 = smov 0   ;;  %s597_s15 = smov 0  }
   0x3 LB: > { %s612_s16 = sadd.s32 4294967295, %s559_s15   ;;  %s404_s17 = sadd.s32 4294967294, %s559_s15   ;;  %s559_s15 = sphi %s597_s15, %s701_s15   ;;  %s555_s14 = sphi %s595_s14, %s700_s14   ;;  %s551_s13 = sphi %s593_s13, %s699_s13   ;;  %s547_s12 = sphi %s591_s12, %s698_s12  }
   0x4   : > { %s616_s18 = sadd.s32 1, %s559_s15   ;;  %s91_s19 = sadd.s32 1, %s555_s14 }
   0x5   : > { %s88_s20 = ssub.s32 %s559_s15, %s616_s18  ;;  %p101_p0 = scmp.ne.s32.totalorder %s555_s14, %s551_s13 }
   0x6   : > { %p89_p1 = scmp.eq.s32.totalorder %s88_s20, 0  ;;  %p102_p2 = scmp.eq.s32.totalorder %s612_s16, 1 }
   0x7   : > { %p107_p3 = scmp.ne.s32.totalorder %s551_s13, %s547_s12  ;;  %p108_p4 = scmp.eq.s32.totalorder %s404_s17, 1 }
   0x8   : > { %s627_s21 = scalar_select %p89_p1, %s555_s14, %s91_s19  }
   0x9   : > { %p629_p5 = por %p102_p2, %p101_p0  ;;  %p633_p6 = por %p108_p4, %p107_p3 }
   0xa   : > { %p407_p7 = scmp.ge.s32.totalorder %s559_s15, 1  ;;  %p139_p8 = scmp.lt.s32.totalorder %s559_s15, 3 }
   0xc   : > { %p140_p9 = pnand %p407_p7, %p139_p8 }
   0xd   : > { %p162_p10 = scmp.lt.s32.totalorder (!%p140_p9), %s612_s16, 1  ;;  %s563_s29 = smov (!%p140_p9), 126  }
   0xe   : > { %143 = sbr.rel (%p140_p9) target bundleno = 892 (0x37c), region = 32  ;;  %s564_s30 = smov (!%p140_p9), 2  }
   0xf   : > { %s567_s20 = smov (!%p140_p9), 0.0   ;;  %s569_s27 = smov (!%p140_p9), 1  }
  0x13   : > { %vm189_vm0 = vcmask 124016   ;;  %v561_v0 = vmov 0   ;;  %vm167_vm1 = vcmask 9216   ;;  %vm169_vm2 = vcmask 125954   ;;  %s163_s24 = scalar_select %p162_p10, %s612_s16, 1  ;;  %v647_v8 = vld [vmem:[%s694_s2] sm:$0xff] }
  0x14   : > { %190 = vst.msk [vmem:[#allocation2 + $0x10] sm:$0x3] %vm189_vm0, %v561_v0  ;;  %490 = vset.pattern.permute.xlu1 %v561_v0  ;;  %v562_v1 = vmov 0.0   ;;  %vm171_vm3 = vcmask 125952   ;;  %vm187_vm4 = vcmask 123904   ;;  %vm565_vm5 = vmmov 0  }
  0x15   : > { %168 = vst.msk [vmem:[#allocation2] sm:$0x3] %vm167_vm1, %v561_v0  ;;  %426 = vmatprep.subr.bf16.mxu0 %v562_v1  ;;  %s409_s25 = sshll.u32 %s163_s24, 2  ;;  %432 = vmatprep.mubr.msk.bf16.mxu0 %vm565_vm5, %v562_v1  ;;  %vm201_vm6 = vcmask 107520   ;;  %vm181_vm7 = vcmask 123920   ;;  %vm234_vm8 = vcmask 392192  }
  0x16   : > { %191 = vst.msk [vmem:[#allocation2 + $0x10] sm:$0xc] %vm169_vm2, %v561_v0  ;;  %170 = vst.msk [vmem:[#allocation2] sm:$0xc] %vm169_vm2, %v561_v0  ;;  %s165_s28 = scalar_lea.vmem %s692_s0, %s409_s25  ;;  %213 = vperm.xlu1 %490, %v647_v8   ;;  %v203_v14 = vld [vmem:[%s693_s1] sm:$0xf] }
  0x17   : > { %183 = vst.msk [vmem:[#allocation2 + $0x8] sm:$0xc] %vm169_vm2, %v561_v0  ;;  %v193_v2 = vld [vmem:[%s165_s28] sm:$0xf]  ;;  %vm278_vm9 = vcmask 130048   ;;  %v566_v37 = vmov 1  }
  0x18   : > { %192 = vst.msk [vmem:[#allocation2 + $0x14] sm:$0xf] %vm171_vm3, %v561_v0  ;;  %172 = vst.msk [vmem:[#allocation2 + $0x4] sm:$0xf] %vm171_vm3, %v561_v0  ;;  %v185_v3 = vld [vmem:[%s165_s28] sm:$0xf]  ;;  %v421_v5 = vpack.c.bf16 %v193_v2, %v193_v2 }
  0x19   : > { %184 = vst.msk [vmem:[#allocation2 + $0xc] sm:$0xf] %vm171_vm3, %v561_v0  ;;  %v173_v4 = vld [vmem:[%s165_s28] sm:$0xf]  ;;  %v186_v6 = vpack.c.bf16 %v185_v3, %v185_v3  ;;  %v568_v41 = vmov 2   ;;  %s159_s28 = sand.u32 1, %s551_s13  }
  0x1a   : > { %198 = vrot.lane.b32.xlu0 %v421_v5, %s563_s29  ;;  %v420_v7 = vpack.c.bf16 %v173_v4, %v173_v4  ;;  %491 = vset.pattern.permute.xlu1 %v566_v37  ;;  %s408_s29 = sshll.u32 %s159_s28, 3 }
  0x1b   : > { %188 = vst.msk [vmem:[#allocation2 + $0x8] sm:$0x3] %vm187_vm4, %v186_v6  ;;  %493 = vset.pattern.permute.xlu0 %v568_v41  ;;  %s161_s4 = scalar_lea.vmem [#allocation3], %s408_s29 }
  0x1c   : > { %s345_s5 = sshll.u32 %s161_s4, 4  ;;  %s346_s5 = int_to_ptr.vmem [resolvable:$true] %s345_s5 }
  0x1e   : > { %178 = vrot.lane.b32.xlu0 %v420_v7, %s564_s30  ;;  %s417_s30 = sshll.u32 %s612_s16, 7 }
  0x22   : > { %v495_v12 = vld [vmem:[#allocation2 + $0x8] sm:$0xff]  }
  0x8c   : > { %v199_v9 = vpop.permute.xlu0 %198 }
  0x8d   : > { %202 = vst.msk [vmem:[#allocation2 + $0x10] sm:$0x3] %vm201_vm6, %v199_v9 }
  0x90   : > { %v179_v10 = vpop.permute.xlu0 %178 }
  0x91   : > { %182 = vst.msk [vmem:[#allocation2] sm:$0x3] %vm181_vm7, %v179_v10  ;;  %v214_v15 = vpop.permute.xlu1 %213 }
  0x94   : > { %v494_v11 = vld [vmem:[#allocation2 + $0x10] sm:$0xff]  }
  0x95   : > { %427 = vmatpush3.bf16.msra.mxu0 %v494_v11 }
  0x96   : > { %428 = vmatprep.subr.bf16.mxu0 %v562_v1 }
  0x98   : > { %v496_v13 = vld [vmem:[#allocation2] sm:$0xff]  }
  0x99   : > { %429 = vmatpush3.bf16.msra.mxu0 %v495_v12 }
  0x9a   : > { %430 = vmatprep.subr.bf16.mxu0 %v562_v1 }
  0x9d   : > { %431 = vmatpush3.bf16.msra.mxu0 %v496_v13 }
  0xa0   : > { %433 = vmatmul.mubr.msk.bf16.vlgmr.msra.gmra.mxu0 %vm234_vm8, %v203_v14 }
 0x160   : > { %v272_v16 = vpop.f32.mrf.mxu0 }
 0x161   : > { %v273_v17 = vadd.f32 %v272_v16, %v214_v15 }
 0x162   : > { %v434_v18 = vpop.f32.mrf.mxu0 }
 0x163   : > { %v279_v19 = vsel %vm278_vm9, %v273_v17, 0.0  ;;  %v289_v20 = vmul.f32 %v273_v17, %v273_v17 }
 0x164   : > { %280 = vadd.xlane.f32.xlu1 %v279_v19  ;;  %v275_v21 = vpop.f32.mrf.mxu0 }
 0x165   : > { %v290_v22 = vsel %vm278_vm9, %v289_v20, 0.0 }
 0x166   : > { %291 = vadd.xlane.f32.xlu0 %v290_v22  ;;  %v435_v23 = vpop.f32.mrf.mxu0 }
 0x1ed   : > { %v281_v24 = vpop.xlane.xlu1 %280 }
 0x1ee   : > { %v282_v25 = vrot.slane %v281_v24, 4 }
 0x1ef   : > { %v292_v26 = vpop.xlane.xlu0 %291 }
 0x1f0   : > { %v283_v27 = vadd.f32 %v282_v25, %v281_v24  ;;  %v293_v28 = vrot.slane %v292_v26, 4 }
 0x1f2   : > { %v284_v29 = vrot.slane %v283_v27, 2  ;;  %v294_v30 = vadd.f32 %v293_v28, %v292_v26 }
 0x1f4   : > { %v295_v31 = vrot.slane %v294_v30, 2  ;;  %v285_v32 = vadd.f32 %v284_v29, %v283_v27 }
 0x1f6   : > { %v286_v33 = vrot.slane %v285_v32, 1  ;;  %v296_v34 = vadd.f32 %v295_v31, %v294_v30 }
 0x1f8   : > { %v287_v35 = vadd.f32 %v286_v33, %v285_v32  ;;  %v297_v36 = vrot.slane %v296_v34, 1 }
 0x1fa   : > { %436 = vpush %v287_v35  ;;  %v298_v38 = vadd.f32 %v297_v36, %v296_v34 }
 0x1fc   : > { %438 = vpush %v298_v38 }
 0x22b   : > { %s437_s8 = spop %436 }
 0x22c   : > { %s300_s9 = smul.f32 0.0078125, %s437_s8  ;;  %s343_s8 = scalar_lea.hbm %s695_s3, %s417_s30 }
 0x22d   : > { %s439_s10 = spop %438 }
 0x22e   : > { %s302_s11 = smul.f32 %s300_s9, %s300_s9  ;;  %v311_v44 = vstv %s300_s9  ;;  %s332_s9 = scalar_lea.sflag [#allocation4], %s159_s28 }
 0x22f   : > { %s301_s17 = smul.f32 0.0078125, %s439_s10  ;;  %s499_s10 = scalar_lea.vmem %s346_s5, 128 }
 0x230   : > { %p500_p11 = scmp.ne.s32.totalorder %s346_s5, %s499_s10 }
 0x231   : > { %s303_s19 = ssub.f32 %s301_s17, %s302_s11  ;;  %s570_s11 = smov [#allocation3]  }
 0x232   : > { %p501_p12 = pnand %p500_p11, %p629_p5  ;;  %s503_s16 = sshll.u32 %s570_s11, 4  ;;  %s504_s16 = int_to_ptr.vmem [resolvable:$false] %s503_s16 }
 0x233   : > { %s304_s24 = smax.f32 %s567_s20, %s303_s19  ;;  %s505_s17 = scalar_lea.vmem %s504_s16, 256 }
 0x234   : > { %s305_s25 = sadd.f32 1e-08, %s304_s24  ;;  %p502_p13 = pneg %p501_p12 }
 0x235   : > { %p506_p0 = scmp.lt.s32.totalorder %s346_s5, %s504_s16  ;;  %p507_p1 = scmp.lt.s32.totalorder %s505_s17, %s499_s10 }
 0x236   : > { %v306_v39 = vstv %s305_s25 }
 0x237   : > { %497 = vrsqrt.f32 %v306_v39  ;;  %p508_p2 = por %p507_p1, %p506_p0 }
 0x239   : > { %p509_p3 = pnand %p508_p2, %p502_p13 }
 0x244   : > { %v498_v40 = vpop.eup %497 }
 0x245   : > { %440 = vpush %v498_v40 }
 0x276   : > { %s441_s26 = spop %440 }
 0x277   : > { %v309_v42 = vstv %s441_s26 }
 0x278   : > { %v310_v43 = vmul.f32 %v309_v42, %v647_v8 }
 0x27a   : > { %v312_v45 = vmul.f32 %v311_v44, %v310_v43  ;;  %320 = vperm.xlu1 %491, %v310_v43  }
 0x27c   : > { %314 = vrot.lane.b32.xlu0 %v312_v45, %s569_s27 }
 0x27e   : > { %492 = vset.pattern.permute.xlu1 %v568_v41 }
 0x2ee   : > { %v315_v46 = vpop.permute.xlu0 %314 }
 0x2ef   : > { %v317_v47 = vsub.f32 %v647_v8, %v315_v46 }
 0x2f1   : > { %326 = vperm.xlu1 %492, %v317_v47  }
 0x2f5   : > { %v321_v48 = vpop.permute.xlu1 %320 }
 0x2f6   : > { %v323_v49 = vmul.f32 %v321_v48, %v273_v17 }
 0x36c   : > { %v327_v50 = vpop.permute.xlu1 %326 }
 0x36d   : > { %v329_v51 = vadd.f32 %v327_v50, %v323_v49 }
 0x36f   : > { %330 = vst.msk [vmem:[%s161_s4] sm:$0xff] %vm278_vm9, %v329_v51 }
 0x370   : > { %512 = shalt.err (!%p509_p3)
}
 0x371   : > { %s513_s19 = scalar_lea.hbm %s343_s8, 128  ;;  %s517_s25 = scalar_lea.hbm %s695_s3, 256 }
 0x372   : > { %p514_p4 = scmp.ne.s32.totalorder %s343_s8, %s513_s19  ;;  %p518_p9 = scmp.lt.s32.totalorder %s343_s8, %s695_s3 }
 0x373   : > { %p519_p10 = scmp.lt.s32.totalorder %s517_s25, %s513_s19 }
 0x374   : > { %p515_p7 = pnand %p514_p4, %p629_p5 }
 0x375   : > { %p520_p11 = por %p519_p10, %p518_p9 }
 0x376   : > { %p516_p8 = pneg %p515_p7 }
 0x378   : > { %p521_p12 = pnand %p520_p11, %p516_p8 }
 0x37a   : > { %524 = shalt.err (!%p521_p12)
}
 0x37b   : > { %442 = dma.vmem_to_hbm [thread:$0]  (%p629_p5), %s346_s5, 128, %s343_s8, %s332_s9  }
 0x37c PF: > { %p448_p13 = scmp.ge.s32.totalorder %s559_s15, 2  ;;  %s357_s28 = sand.u32 1, %s547_s12  }
 0x37d   : > { %s358_s29 = scalar_lea.sflag [#allocation4], %s357_s28 }
 0x37e   : > { %p445_p0 = pnand %p448_p13, %p633_p6 }
 0x380   : > { %p446_p1 = pneg %p445_p0 }
 0x382   : > { %542 = dma.done.wait (%p446_p1), %s358_s29, 128  }
 0x383   : > { %544 = vsyncadd (%p446_p1), %s358_s29, 4294967168  ;;  %p13_p2 = scmp.ge.s32.totalorder %s616_s18, 4   ;;  %s698_s12 = smov %s551_s13 }
 0x384   : > { %s699_s13 = smov %s555_s14  ;;  %s700_s14 = smov %s627_s21 }
 0x385   : > { %s701_s15 = smov %s616_s18  ;;  %15 = sbr.rel (!%p13_p2) target bundleno = 3 (0x3), region = 67 }
 0x38a   :  { %363 = vsyncpa [#allocation4], 1 }
 0x38b   :  { %365 = vsyncpa [#allocation4 + $0x1], 1 }

</bundles_post_ra>
